<compile_context>
chip_gen: v5e
topology: v5e:2x2
jax: 0.10.0
libtpu: 0.0.40
codegen_flags: <defaults>
</compile_context>

<pallas_src>
import jax
import jax.numpy as jnp
from jax.experimental import pallas as pl
from jax.experimental.pallas import tpu as pltpu

INPUT_SIZE = 7
H1 = 120
H2 = 84
OUT = 1

TB = 256  # batch tile (lane axis); multiple of 128, well under scoped VMEM limits


def mlp_kernel(xT_ref, w1_ref, b1_ref, w2_ref, b2_ref, w3_ref, b3_ref, o_ref):
    xT = xT_ref[...]                                                  # (7, TB)

    # fc1 + relu : (120, 7) @ (7, TB) -> (120, TB)
    h1 = jnp.dot(w1_ref[...], xT, preferred_element_type=jnp.float32)
    h1 = jnp.maximum(h1 + b1_ref[...], 0.0)

    # fc2 + relu : (84, 120) @ (120, TB) -> (84, TB)
    h2 = jnp.dot(w2_ref[...], h1, preferred_element_type=jnp.float32)
    h2 = jnp.maximum(h2 + b2_ref[...], 0.0)

    # fc3 (out_features = 1): VPU multiply + cross-sublane (XLU) reduce
    # instead of an N=1 matmul.  w3_ref is (84, 1), broadcast over lanes.
    logit = jnp.sum(w3_ref[...] * h2, axis=0, keepdims=True) + b3_ref[...]  # (1, TB)

    o_ref[...] = jax.nn.sigmoid(logit)


def bin_classifik_forward(x, w1, b1, w2, b2, w3, b3, tb=TB):
    """x: (B, 7) float32; weights in PyTorch (out, in) layout.

    Returns (B,) float32 (matches the torch .squeeze() for B > 1).
    """
    B = x.shape[0]
    b_pad = max(tb, ((B + tb - 1) // tb) * tb)
    num_tiles = b_pad // tb

    # Batch on the lane axis; pad batch to a multiple of the tile.
    xT = jnp.pad(x.T, ((0, 0), (0, b_pad - B)))                       # (7, B_pad)

    weight_spec = lambda shape: pl.BlockSpec(shape, lambda i: (0, 0))

    out = pl.pallas_call(
        mlp_kernel,
        out_shape=jax.ShapeDtypeStruct((1, b_pad), jnp.float32),
        grid=(num_tiles,),
        in_specs=[
            pl.BlockSpec((INPUT_SIZE, tb), lambda i: (0, i)),          # xT (streamed)
            weight_spec((H1, INPUT_SIZE)),                             # w1 (resident)
            weight_spec((H1, 1)),                                      # b1
            weight_spec((H2, H1)),                                     # w2
            weight_spec((H2, 1)),                                      # b2
            weight_spec((H2, 1)),                                      # w3 (as column)
            weight_spec((1, 1)),                                       # b3
        ],
        out_specs=pl.BlockSpec((1, tb), lambda i: (0, i)),             # lane-dense out
        compiler_params=pltpu.CompilerParams(
            dimension_semantics=("parallel",),
        ),
    )(
        xT,
        w1, b1.reshape(H1, 1),
        w2, b2.reshape(H2, 1),
        w3.reshape(OUT, H2).T,  # (84, 1)
        b3.reshape(1, 1),
    )

    # Drop padding; squeeze the singleton feature axis (glue, matches torch.squeeze).
    return out[0, :B]


def init_params(key):
    """Deterministic init mimicking nn.Linear's U(-1/sqrt(fan_in), 1/sqrt(fan_in)).

    Weights are in PyTorch (out_features, in_features) layout.
    """
    ks = jax.random.split(key, 6)

    def lin(kw, kb, fan_in, fan_out):
        bound = 1.0 / jnp.sqrt(fan_in)
        w = jax.random.uniform(kw, (fan_out, fan_in), jnp.float32, -bound, bound)
        b = jax.random.uniform(kb, (fan_out,), jnp.float32, -bound, bound)
        return w, b

    w1, b1 = lin(ks[0], ks[1], INPUT_SIZE, H1)
    w2, b2 = lin(ks[2], ks[3], H1, H2)
    w3, b3 = lin(ks[4], ks[5], H2, OUT)
    return w1, b1, w2, b2, w3, b3


if __name__ == "__main__":
    key = jax.random.PRNGKey(0)
    k_params, k_x = jax.random.split(key)

    params = init_params(k_params)
    B = 8
    x = jax.random.normal(k_x, (B, INPUT_SIZE), dtype=jnp.float32)

    y = bin_classifik_forward(x, *params)
    jax.block_until_ready(y)

    # Sanity check against a pure-JAX reference (PyTorch semantics: x @ W.T + b).
    w1, b1, w2, b2, w3, b3 = params
    h1 = jnp.maximum(x @ w1.T + b1, 0.0)
    h2 = jnp.maximum(h1 @ w2.T + b2, 0.0)
    ref = jax.nn.sigmoid(h2 @ w3.T + b3).squeeze(-1)

    assert y.shape == (B,), y.shape
    assert jnp.allclose(y, ref, atol=1e-5, rtol=1e-5)

    print("KERNEL_OK")
</pallas_src>

<mosaic_0001>
module attributes {stable_mosaic.version = 11 : i64} {
  func.func @mlp_kernel(%arg0: i32, %arg1: memref<7x256xf32, #tpu.memory_space<vmem>>, %arg2: memref<120x7xf32, #tpu.memory_space<vmem>>, %arg3: memref<120x1xf32, #tpu.memory_space<vmem>>, %arg4: memref<84x120xf32, #tpu.memory_space<vmem>>, %arg5: memref<84x1xf32, #tpu.memory_space<vmem>>, %arg6: memref<84x1xf32, #tpu.memory_space<vmem>>, %arg7: memref<1x1xf32, #tpu.memory_space<vmem>>, %arg8: memref<1x256xf32, #tpu.memory_space<vmem>>) attributes {dimension_semantics = [#tpu.dimension_semantics<parallel>], iteration_bounds = array<i64: 1>, scalar_prefetch = 0 : i64, scratch_operands = 0 : i64, tpu.core_type = #tpu.core_type<tc>, window_params = [{transform_indices = @transform_0, window_bounds = array<i64: 7, 256>}, {pipeline_mode = #tpu.pipeline_mode<synchronous>, transform_indices = @transform_1, window_bounds = array<i64: 120, 7>}, {pipeline_mode = #tpu.pipeline_mode<synchronous>, transform_indices = @transform_2, window_bounds = array<i64: 120, 1>}, {pipeline_mode = #tpu.pipeline_mode<synchronous>, transform_indices = @transform_3, window_bounds = array<i64: 84, 120>}, {pipeline_mode = #tpu.pipeline_mode<synchronous>, transform_indices = @transform_4, window_bounds = array<i64: 84, 1>}, {pipeline_mode = #tpu.pipeline_mode<synchronous>, transform_indices = @transform_5, window_bounds = array<i64: 84, 1>}, {pipeline_mode = #tpu.pipeline_mode<synchronous>, transform_indices = @transform_6, window_bounds = array<i64: 1, 1>}, {transform_indices = @transform_7, window_bounds = array<i64: 1, 256>}]} {
    %c0 = arith.constant 0 : index
    %c0_0 = arith.constant 0 : index
    %0 = vector.load %arg1[%c0, %c0_0] : memref<7x256xf32, #tpu.memory_space<vmem>>, vector<7x256xf32>
    %c0_1 = arith.constant 0 : index
    %c0_2 = arith.constant 0 : index
    %1 = vector.load %arg2[%c0_1, %c0_2] : memref<120x7xf32, #tpu.memory_space<vmem>>, vector<120x7xf32>
    %cst = arith.constant dense<0.000000e+00> : vector<120x256xf32>
    %2 = tpu.matmul %1, %0, %cst {dimension_numbers = #tpu.dot_dimension_numbers<[1], [0], [0], [1], [0, 0, 1, 1], [], []>} : vector<120x7xf32>, vector<7x256xf32>, vector<120x256xf32> -> vector<120x256xf32>
    %c0_3 = arith.constant 0 : index
    %c0_4 = arith.constant 0 : index
    %3 = vector.load %arg3[%c0_3, %c0_4] : memref<120x1xf32, #tpu.memory_space<vmem>>, vector<120x1xf32>
    %4 = vector.broadcast %3 : vector<120x1xf32> to vector<120x256xf32>
    %5 = arith.addf %2, %4 : vector<120x256xf32>
    %cst_5 = arith.constant 0.000000e+00 : f32
    %6 = vector.broadcast %cst_5 : f32 to vector<120x256xf32>
    %7 = arith.maximumf %5, %6 : vector<120x256xf32>
    %c0_6 = arith.constant 0 : index
    %c0_7 = arith.constant 0 : index
    %8 = vector.load %arg4[%c0_6, %c0_7] : memref<84x120xf32, #tpu.memory_space<vmem>>, vector<84x120xf32>
    %cst_8 = arith.constant dense<0.000000e+00> : vector<84x256xf32>
    %9 = tpu.matmul %8, %7, %cst_8 {dimension_numbers = #tpu.dot_dimension_numbers<[1], [0], [0], [1], [0, 0, 1, 1], [], []>} : vector<84x120xf32>, vector<120x256xf32>, vector<84x256xf32> -> vector<84x256xf32>
    %c0_9 = arith.constant 0 : index
    %c0_10 = arith.constant 0 : index
    %10 = vector.load %arg5[%c0_9, %c0_10] : memref<84x1xf32, #tpu.memory_space<vmem>>, vector<84x1xf32>
    %11 = vector.broadcast %10 : vector<84x1xf32> to vector<84x256xf32>
    %12 = arith.addf %9, %11 : vector<84x256xf32>
    %cst_11 = arith.constant 0.000000e+00 : f32
    %13 = vector.broadcast %cst_11 : f32 to vector<84x256xf32>
    %14 = arith.maximumf %12, %13 : vector<84x256xf32>
    %c0_12 = arith.constant 0 : index
    %c0_13 = arith.constant 0 : index
    %15 = vector.load %arg6[%c0_12, %c0_13] : memref<84x1xf32, #tpu.memory_space<vmem>>, vector<84x1xf32>
    %16 = vector.broadcast %15 : vector<84x1xf32> to vector<84x256xf32>
    %17 = arith.mulf %16, %14 : vector<84x256xf32>
    %cst_14 = arith.constant dense<0.000000e+00> : vector<256xf32>
    %18 = vector.multi_reduction <add>, %17, %cst_14 [0] : vector<84x256xf32> to vector<256xf32>
    %19 = vector.shape_cast %18 : vector<256xf32> to vector<1x256xf32>
    %c0_15 = arith.constant 0 : index
    %c0_16 = arith.constant 0 : index
    %20 = vector.load %arg7[%c0_15, %c0_16] : memref<1x1xf32, #tpu.memory_space<vmem>>, vector<1x1xf32>
    %21 = vector.broadcast %20 : vector<1x1xf32> to vector<1x256xf32>
    %22 = arith.addf %19, %21 : vector<1x256xf32>
    %23 = arith.negf %22 : vector<1x256xf32>
    %24 = math.exp %23 : vector<1x256xf32>
    %cst_17 = arith.constant 1.000000e+00 : f32
    %25 = vector.broadcast %cst_17 : f32 to vector<1x256xf32>
    %26 = arith.addf %25, %24 : vector<1x256xf32>
    %27 = arith.divf %25, %26 : vector<1x256xf32>
    %c0_18 = arith.constant 0 : index
    %c0_19 = arith.constant 0 : index
    %28 = vector.load %arg8[%c0_18, %c0_19] : memref<1x256xf32, #tpu.memory_space<vmem>>, vector<1x256xf32>
    tpu.vector_store %arg8[%c0_18, %c0_19], %27 {strides = array<i32>} : memref<1x256xf32, #tpu.memory_space<vmem>>, vector<1x256xf32>,
    return
  }
  func.func @transform_0(%arg0: i32) -> (i32, i32) {
    %c0_i32 = arith.constant 0 : i32
    %c0_i32_0 = arith.constant 0 : i32
    return %c0_i32, %arg0 : i32, i32
  }
  func.func @transform_1(%arg0: i32) -> (i32, i32) {
    %c0_i32 = arith.constant 0 : i32
    %c0_i32_0 = arith.constant 0 : i32
    %c0_i32_1 = arith.constant 0 : i32
    return %c0_i32, %c0_i32_0 : i32, i32
  }
  func.func @transform_2(%arg0: i32) -> (i32, i32) {
    %c0_i32 = arith.constant 0 : i32
    %c0_i32_0 = arith.constant 0 : i32
    %c0_i32_1 = arith.constant 0 : i32
    return %c0_i32, %c0_i32_0 : i32, i32
  }
  func.func @transform_3(%arg0: i32) -> (i32, i32) {
    %c0_i32 = arith.constant 0 : i32
    %c0_i32_0 = arith.constant 0 : i32
    %c0_i32_1 = arith.constant 0 : i32
    return %c0_i32, %c0_i32_0 : i32, i32
  }
  func.func @transform_4(%arg0: i32) -> (i32, i32) {
    %c0_i32 = arith.constant 0 : i32
    %c0_i32_0 = arith.constant 0 : i32
    %c0_i32_1 = arith.constant 0 : i32
    return %c0_i32, %c0_i32_0 : i32, i32
  }
  func.func @transform_5(%arg0: i32) -> (i32, i32) {
    %c0_i32 = arith.constant 0 : i32
    %c0_i32_0 = arith.constant 0 : i32
    %c0_i32_1 = arith.constant 0 : i32
    return %c0_i32, %c0_i32_0 : i32, i32
  }
  func.func @transform_6(%arg0: i32) -> (i32, i32) {
    %c0_i32 = arith.constant 0 : i32
    %c0_i32_0 = arith.constant 0 : i32
    %c0_i32_1 = arith.constant 0 : i32
    return %c0_i32, %c0_i32_0 : i32, i32
  }
  func.func @transform_7(%arg0: i32) -> (i32, i32) {
    %c0_i32 = arith.constant 0 : i32
    %c0_i32_0 = arith.constant 0 : i32
    return %c0_i32, %arg0 : i32, i32
  }
}

</mosaic_0001>

<bundles_post_ra>
// kernel: tpu_custom_call.1
= control target key start
LH: loop header
LB: loop body
LE: loop exit
PB: predicated region body
PF: predicated region fallthrough
CT: control target
= control target key end

     0   :  { %s1211_s0 = inlined_call_operand.vmem [shape: f32[7,256], index: 0, kind: input, shape index: {}]   ;;  %s1212_s1 = inlined_call_operand.vmem [shape: f32[120,7], index: 1, kind: input, shape index: {}]   ;;  %s1213_s2 = inlined_call_operand.vmem [shape: f32[120,1], index: 2, kind: input, shape index: {}]   ;;  %s1214_s3 = inlined_call_operand.vmem [shape: f32[84,120], index: 3, kind: input, shape index: {}]   ;;  %s1215_s4 = inlined_call_operand.vmem [shape: f32[84,1], index: 4, kind: input, shape index: {}]   ;;  %s1216_s5 = inlined_call_operand.vmem [shape: f32[84,1], index: 5, kind: input, shape index: {}]   ;;  %s1217_s6 = inlined_call_operand.<no memory space> [shape: f32[1,1], index: 6, kind: input, shape index: {}]   ;;  %s1218_s7 = inlined_call_operand.hbm [shape: f32[1,256], index: 7, kind: output, shape index: {}]  }
   0x1   :  { %v12_v0 = vstv %s1217_s6 }
   0x2   :  { %13 = vst [vmem:[#allocation2] sm:$0x1] %v12_v0 }
   0x3   :  { %v29_v1 = vld [vmem:[%s1211_s0] sm:$0x7f]  ;;  %vm182_vm0 = vcmask 1046528   ;;  %v30_v2 = vld [vmem:[%s1211_s0 + $0x8] sm:$0x7f]  ;;  %v868_v3 = vmov 0  }
   0x4   :  { %832 = vset.pattern.permute.xlu1 %v868_v3  ;;  %831 = vset.pattern.permute.xlu0 %v868_v3  ;;  %v60_v4 = vld [vmem:[%s1213_s2 + $0x70] sm:$0xff]  ;;  %v58_v5 = vld [vmem:[%s1213_s2 + $0x60] sm:$0xff]  ;;  %vm136_vm1 = vcmask 56320   ;;  %v59_v8 = vld [vmem:[%s1213_s2 + $0x68] sm:$0xff] }
   0x5   :  { %v31_v6 = vld [vmem:[%s1212_s1] sm:$0xff]  ;;  %773 = vmatpush.msk.msra.mxu0 %vm182_vm0, %v29_v1  ;;  %789 = vmatpush.msk.msra.mxu1 %vm182_vm0, %v30_v2  ;;  %v56_v7 = vld [vmem:[%s1213_s2 + $0x50] sm:$0xff]  ;;  %v57_v9 = vld [vmem:[%s1213_s2 + $0x58] sm:$0xff] }
   0x6   :  { %133 = vperm.xlu0 %831, %v60_v4   ;;  %123 = vperm.xlu1 %832, %v58_v5  }
   0x7   :  { %774 = vmatmul.msk.f32.vlgmr.msra.gmra.mxu0 %vm136_vm1, %v31_v6  ;;  %790 = vmatmul.msk.f32.vlgmr.msra.gmra.mxu1 %vm136_vm1, %v31_v6 }
   0x8   :  { %833 = vset.pattern.permute.xlu2 %v868_v3 }
   0x9   :  { %113 = vperm.xlu2 %833, %v56_v7  }
   0xa   :  { %14 = vsyncpa [#allocation4], 0  ;;  %v32_v10 = vld [vmem:[%s1212_s1 + $0x8] sm:$0xff]  ;;  %v54_v12 = vld [vmem:[%s1213_s2 + $0x40] sm:$0xff]  ;;  %vm420_vm2 = vcmask 982016   ;;  %vm673_vm3 = vcmask 1043456  }
   0xb   :  { %v55_v11 = vld [vmem:[%s1213_s2 + $0x48] sm:$0xff]  ;;  %v53_v13 = vld [vmem:[%s1213_s2 + $0x38] sm:$0xff]  ;;  %v33_v14 = vld [vmem:[%s1212_s1 + $0x10] sm:$0xff]  ;;  %vm749_vm11 = vcmask 1040384  }
   0xc   :  { %v52_v15 = vld [vmem:[%s1213_s2 + $0x30] sm:$0xff]  ;;  %v51_v16 = vld [vmem:[%s1213_s2 + $0x28] sm:$0xff]  ;;  %v50_v17 = vld [vmem:[%s1213_s2 + $0x20] sm:$0xff] }
   0xd   :  { %v34_v18 = vld [vmem:[%s1212_s1 + $0x18] sm:$0xff]  ;;  %v48_v20 = vld [vmem:[%s1213_s2 + $0x10] sm:$0xff]  ;;  %v47_v21 = vld [vmem:[%s1213_s2 + $0x8] sm:$0xff] }
   0xe   :  { %128 = vperm.xlu0 %831, %v59_v8   ;;  %118 = vperm.xlu1 %832, %v57_v9   ;;  %v49_v19 = vld [vmem:[%s1213_s2 + $0x18] sm:$0xff]  ;;  %v35_v22 = vld [vmem:[%s1212_s1 + $0x20] sm:$0xff]  ;;  %v355_v25 = vld [vmem:[%s1215_s4 + $0x8] sm:$0xff] }
   0xf   :  { %775 = vmatmul.msk.f32.gmra.mxu0 %vm136_vm1, %v32_v10  ;;  %791 = vmatmul.msk.f32.gmra.mxu1 %vm136_vm1, %v32_v10  ;;  %v46_v23 = vld [vmem:[%s1213_s2] sm:$0xff]  ;;  %v36_v26 = vld [vmem:[%s1212_s1 + $0x28] sm:$0xff]  ;;  %v357_v27 = vld [vmem:[%s1215_s4 + $0x18] sm:$0xff] }
  0x10   :  { %v354_v24 = vld [vmem:[%s1215_s4] sm:$0xff]  ;;  %v37_v29 = vld [vmem:[%s1212_s1 + $0x30] sm:$0xff]  ;;  %v577_v31 = vld [vmem:[%s1216_s5 + $0x8] sm:$0xff] }
  0x11   :  { %108 = vperm.xlu2 %833, %v55_v11   ;;  %v358_v28 = vld [vmem:[%s1215_s4 + $0x20] sm:$0xff]  ;;  %v38_v32 = vld [vmem:[%s1212_s1 + $0x38] sm:$0xff]  ;;  %v360_v34 = vld [vmem:[%s1215_s4 + $0x30] sm:$0xff] }
  0x12   :  { %v576_v30 = vld [vmem:[%s1216_s5] sm:$0xff]  ;;  %v579_v33 = vld [vmem:[%s1216_s5 + $0x18] sm:$0xff]  ;;  %v356_v35 = vld [vmem:[%s1215_s4 + $0x10] sm:$0xff] }
  0x13   :  { %v39_v36 = vld [vmem:[%s1212_s1 + $0x40] sm:$0xff]  ;;  %v361_v37 = vld [vmem:[%s1215_s4 + $0x38] sm:$0xff]  ;;  %v581_v38 = vld [vmem:[%s1216_s5 + $0x28] sm:$0xff] }
  0x14   :  { %v359_v39 = vld [vmem:[%s1215_s4 + $0x28] sm:$0xff]  ;;  %v582_v41 = vld [vmem:[%s1216_s5 + $0x30] sm:$0xff]  ;;  %v584_v46 = vld [vmem:[%s1216_s5 + $0x40] sm:$0xff] }
  0x15   :  { %v40_v40 = vld [vmem:[%s1212_s1 + $0x48] sm:$0xff]  ;;  %v578_v43 = vld [vmem:[%s1216_s5 + $0x10] sm:$0xff]  ;;  %v580_v47 = vld [vmem:[%s1216_s5 + $0x20] sm:$0xff] }
  0x16   :  { %103 = vperm.xlu0 %831, %v54_v12   ;;  %98 = vperm.xlu1 %832, %v53_v13   ;;  %v363_v42 = vld [vmem:[%s1215_s4 + $0x48] sm:$0xff]  ;;  %v41_v44 = vld [vmem:[%s1212_s1 + $0x50] sm:$0xff]  ;;  %v42_v48 = vld [vmem:[%s1212_s1 + $0x58] sm:$0xff] }
  0x17   :  { %776 = vmatmul.msk.f32.gmra.mxu0 %vm136_vm1, %v33_v14  ;;  %792 = vmatmul.msk.f32.gmra.mxu1 %vm136_vm1, %v33_v14  ;;  %v364_v45 = vld [vmem:[%s1215_s4 + $0x50] sm:$0xf]  ;;  %v699_v50 = vld [vmem:[#allocation2] sm:$0x1]  ;;  %v44_v53 = vld [vmem:[%s1212_s1 + $0x68] sm:$0xff] }
  0x18   :  { %v586_v49 = vld [vmem:[%s1216_s5 + $0x50] sm:$0xf]  ;;  %v43_v51 = vld [vmem:[%s1212_s1 + $0x60] sm:$0xff]  ;;  %v583_v54 = vld [vmem:[%s1216_s5 + $0x38] sm:$0xff] }
  0x19   :  { %93 = vperm.xlu2 %833, %v52_v15   ;;  %v362_v52 = vld [vmem:[%s1215_s4 + $0x40] sm:$0xff]  ;;  %v45_v55 = vld [vmem:[%s1212_s1 + $0x70] sm:$0xff]  ;;  %v585_v56 = vld [vmem:[%s1216_s5 + $0x48] sm:$0xff]  ;;  %s764_s4 = sshll.u32 %s1218_s7, 4  ;;  %s765_s4 = int_to_ptr.hbm [resolvable:$true] %s764_s4 }
  0x1e   :  { %88 = vperm.xlu0 %831, %v51_v16   ;;  %83 = vperm.xlu1 %832, %v50_v17  }
  0x1f   :  { %777 = vmatmul.msk.f32.gmra.mxu0 %vm136_vm1, %v34_v18  ;;  %793 = vmatmul.msk.f32.gmra.mxu1 %vm136_vm1, %v34_v18 }
  0x21   :  { %78 = vperm.xlu2 %833, %v49_v19  }
  0x26   :  { %73 = vperm.xlu0 %831, %v48_v20   ;;  %68 = vperm.xlu1 %832, %v47_v21  }
  0x27   :  { %778 = vmatmul.msk.f32.gmra.mxu0 %vm136_vm1, %v35_v22  ;;  %794 = vmatmul.msk.f32.gmra.mxu1 %vm136_vm1, %v35_v22 }
  0x29   :  { %63 = vperm.xlu2 %833, %v46_v23  }
  0x2e   :  { %367 = vperm.xlu0 %831, %v354_v24   ;;  %372 = vperm.xlu1 %832, %v355_v25  }
  0x2f   :  { %779 = vmatmul.msk.f32.gmra.mxu0 %vm136_vm1, %v36_v26  ;;  %795 = vmatmul.msk.f32.gmra.mxu1 %vm136_vm1, %v36_v26 }
  0x31   :  { %377 = vperm.xlu2 %833, %v356_v35  }
  0x36   :  { %382 = vperm.xlu0 %831, %v357_v27   ;;  %387 = vperm.xlu1 %832, %v358_v28  }
  0x37   :  { %780 = vmatmul.msk.f32.gmra.mxu0 %vm136_vm1, %v37_v29  ;;  %796 = vmatmul.msk.f32.gmra.mxu1 %vm136_vm1, %v37_v29 }
  0x39   :  { %392 = vperm.xlu2 %833, %v359_v39  }
  0x3e   :  { %589 = vperm.xlu0 %831, %v576_v30   ;;  %594 = vperm.xlu1 %832, %v577_v31  }
  0x3f   :  { %781 = vmatmul.msk.f32.gmra.mxu0 %vm136_vm1, %v38_v32  ;;  %797 = vmatmul.msk.f32.gmra.mxu1 %vm136_vm1, %v38_v32 }
  0x41   :  { %599 = vperm.xlu2 %833, %v578_v43  }
  0x46   :  { %604 = vperm.xlu0 %831, %v579_v33   ;;  %397 = vperm.xlu1 %832, %v360_v34  }
  0x47   :  { %782 = vmatmul.msk.f32.gmra.mxu0 %vm136_vm1, %v39_v36  ;;  %798 = vmatmul.msk.f32.gmra.mxu1 %vm136_vm1, %v39_v36 }
  0x49   :  { %609 = vperm.xlu2 %833, %v580_v47  }
  0x4e   :  { %402 = vperm.xlu0 %831, %v361_v37   ;;  %614 = vperm.xlu1 %832, %v581_v38  }
  0x4f   :  { %783 = vmatmul.msk.f32.gmra.mxu0 %vm136_vm1, %v40_v40  ;;  %799 = vmatmul.msk.f32.gmra.mxu1 %vm136_vm1, %v40_v40 }
  0x51   :  { %407 = vperm.xlu2 %833, %v362_v52  }
  0x56   :  { %619 = vperm.xlu0 %831, %v582_v41   ;;  %412 = vperm.xlu1 %832, %v363_v42  }
  0x57   :  { %784 = vmatmul.msk.f32.gmra.mxu0 %vm136_vm1, %v41_v44  ;;  %800 = vmatmul.msk.f32.gmra.mxu1 %vm136_vm1, %v41_v44 }
  0x59   :  { %624 = vperm.xlu2 %833, %v583_v54  }
  0x5e   :  { %417 = vperm.xlu0 %831, %v364_v45   ;;  %629 = vperm.xlu1 %832, %v584_v46  }
  0x5f   :  { %785 = vmatmul.msk.f32.gmra.mxu0 %vm136_vm1, %v42_v48  ;;  %801 = vmatmul.msk.f32.gmra.mxu1 %vm136_vm1, %v42_v48 }
  0x61   :  { %634 = vperm.xlu2 %833, %v585_v56  }
  0x63   :  { %v114_v19 = vpop.permute.xlu2 %113 }
  0x66   :  { %639 = vperm.xlu0 %831, %v586_v49   ;;  %702 = vperm.xlu1 %832, %v699_v50  }
  0x67   :  { %786 = vmatmul.msk.f32.gmra.mxu0 %vm136_vm1, %v43_v51  ;;  %802 = vmatmul.msk.f32.gmra.mxu1 %vm136_vm1, %v43_v51 }
  0x6b   :  { %v109_v26 = vpop.permute.xlu2 %108 }
  0x6f   :  { %787 = vmatmul.msk.f32.gmra.mxu0 %vm136_vm1, %v44_v53  ;;  %803 = vmatmul.msk.f32.gmra.mxu1 %vm136_vm1, %v44_v53 }
  0x73   :  { %v94_v39 = vpop.permute.xlu2 %93 }
  0x77   :  { %788 = vmatmul.msk.f32.gmra.mxu0 %vm136_vm1, %v45_v55  ;;  %804 = vmatmul.msk.f32.gmra.mxu1 %vm136_vm1, %v45_v55 }
  0x78   :  { %v134_v17 = vpop.permute.xlu0 %133  ;;  %v124_v18 = vpop.permute.xlu1 %123 }
  0x80   :  { %v129_v22 = vpop.permute.xlu0 %128  ;;  %v119_v23 = vpop.permute.xlu1 %118 }
  0x84   :  { %v1105_v57 = vpop.f32.mrf.mxu0  ;;  %v1107_v58 = vpop.f32.mrf.mxu1 }
  0x88   :  { %v104_v27 = vpop.permute.xlu0 %103  ;;  %v99_v34 = vpop.permute.xlu1 %98 }
  0x8c   :  { %v1109_v59 = vpop.f32.mrf.mxu0  ;;  %v1111_v60 = vpop.f32.mrf.mxu1 }
  0x90   :  { %v89_v52 = vpop.permute.xlu0 %88 }
  0x94   :  { %v1113_v61 = vpop.f32.mrf.mxu0  ;;  %v1115_v62 = vpop.f32.mrf.mxu1 }
  0x9c   :  { %v1117_v63 = vpop.f32.mrf.mxu0  ;;  %v1119_v0 = vpop.f32.mrf.mxu1 }
  0xa4   :  { %v1121_v1 = vpop.f32.mrf.mxu0  ;;  %v1123_v2 = vpop.f32.mrf.mxu1 }
  0xac   :  { %v1125_v3 = vpop.f32.mrf.mxu0  ;;  %v1127_v4 = vpop.f32.mrf.mxu1 }
  0xb4   :  { %v1129_v5 = vpop.f32.mrf.mxu0  ;;  %v1131_v6 = vpop.f32.mrf.mxu1 }
  0xbc   :  { %v227_v7 = vpop.f32.mrf.mxu0  ;;  %v289_v8 = vpop.f32.mrf.mxu1 }
  0xc4   :  { %v230_v9 = vpop.f32.mrf.mxu0  ;;  %v292_v10 = vpop.f32.mrf.mxu1 }
  0xc5   :  { %v231_v53 = vadd.f32 %v230_v9, %v104_v27  ;;  %v293_v54 = vadd.f32 %v292_v10, %v104_v27  ;;  %v222_v9 = vadd.f32 %v1125_v3, %v89_v52  ;;  %v284_v10 = vadd.f32 %v1127_v4, %v89_v52 }
  0xc7   :  { %v323_v3 = vmax.f32 %v222_v9, 0.0 }
  0xcc   :  { %v233_v11 = vpop.f32.mrf.mxu0  ;;  %v295_v12 = vpop.f32.mrf.mxu1 }
  0xcd   :  { %v234_v48 = vadd.f32 %v233_v11, %v109_v26  ;;  %v296_v49 = vadd.f32 %v295_v12, %v109_v26  ;;  %v79_v11 = vpop.permute.xlu2 %78  ;;  %v225_v12 = vadd.f32 %v1129_v5, %v94_v39  ;;  %v324_v26 = vmax.f32 %v284_v10, 0.0 }
  0xd4   :  { %v236_v13 = vpop.f32.mrf.mxu0  ;;  %v298_v14 = vpop.f32.mrf.mxu1 }
  0xd5   :  { %v237_v44 = vadd.f32 %v236_v13, %v114_v19  ;;  %v299_v45 = vadd.f32 %v298_v14, %v114_v19  ;;  %v228_v13 = vadd.f32 %v227_v7, %v99_v34  ;;  %v290_v14 = vadd.f32 %v289_v8, %v99_v34 }
  0xd6   :  { %v329_v19 = vmax.f32 %v231_v53, 0.0 }
  0xd7   :  { %v333_v55 = vmax.f32 %v237_v44, 0.0  ;;  %v334_v56 = vmax.f32 %v299_v45, 0.0  ;;  %v328_v7 = vmax.f32 %v290_v14, 0.0  ;;  %v353_v44 = vld [vmem:[%s1214_s3 + $0x50] sm:$0xf] }
  0xdc   :  { %v239_v15 = vpop.f32.mrf.mxu0  ;;  %v301_v16 = vpop.f32.mrf.mxu1 }
  0xdd   :  { %v240_v40 = vadd.f32 %v239_v15, %v119_v23  ;;  %v302_v41 = vadd.f32 %v301_v16, %v119_v23  ;;  %v84_v15 = vpop.permute.xlu1 %83  ;;  %v331_v16 = vmax.f32 %v234_v48, 0.0  ;;  %v325_v23 = vmax.f32 %v225_v12, 0.0 }
  0xde   :  { %v219_v8 = vadd.f32 %v1121_v1, %v84_v15 }
  0xdf   :  { %v335_v50 = vmax.f32 %v240_v40, 0.0  ;;  %v336_v51 = vmax.f32 %v302_v41, 0.0  ;;  %v349_v40 = vld [vmem:[%s1214_s3 + $0x30] sm:$0xff]  ;;  %v350_v41 = vld [vmem:[%s1214_s3 + $0x38] sm:$0xff] }
  0xe4   :  { %v242_v20 = vpop.f32.mrf.mxu0  ;;  %v304_v21 = vpop.f32.mrf.mxu1 }
  0xe5   :  { %v243_v35 = vadd.f32 %v242_v20, %v124_v18  ;;  %v305_v36 = vadd.f32 %v304_v21, %v124_v18  ;;  %v287_v18 = vadd.f32 %v1131_v6, %v94_v39  ;;  %v330_v20 = vmax.f32 %v293_v54, 0.0  ;;  %v74_v6 = vpop.permute.xlu0 %73  ;;  %v69_v4 = vpop.permute.xlu1 %68  ;;  %v348_v39 = vld [vmem:[%s1214_s3 + $0x28] sm:$0xff] }
  0xe6   :  { %v327_v21 = vmax.f32 %v228_v13, 0.0  ;;  %v213_v27 = vadd.f32 %v1113_v61, %v74_v6  ;;  %v275_v1 = vadd.f32 %v1115_v62, %v74_v6 }
  0xe7   :  { %v337_v46 = vmax.f32 %v243_v35, 0.0  ;;  %v338_v47 = vmax.f32 %v305_v36, 0.0  ;;  %v326_v5 = vmax.f32 %v287_v18, 0.0 }
  0xe8   :  { %v317_v61 = vmax.f32 %v213_v27, 0.0  ;;  %v318_v62 = vmax.f32 %v275_v1, 0.0 }
  0xec   :  { %v245_v24 = vpop.f32.mrf.mxu0  ;;  %v307_v25 = vpop.f32.mrf.mxu1 }
  0xed   :  { %v246_v30 = vadd.f32 %v245_v24, %v129_v22  ;;  %v308_v31 = vadd.f32 %v307_v25, %v129_v22  ;;  %v281_v22 = vadd.f32 %v1123_v2, %v84_v15  ;;  %v216_v24 = vadd.f32 %v1117_v63, %v79_v11  ;;  %v373_v52 = vpop.permute.xlu1 %372 }
  0xee   :  { %v278_v25 = vadd.f32 %v1119_v0, %v79_v11  ;;  %v272_v63 = vadd.f32 %v1111_v60, %v69_v4  ;;  %v343_v60 = vld [vmem:[%s1214_s3] sm:$0xff] }
  0xef   :  { %v339_v42 = vmax.f32 %v246_v30, 0.0  ;;  %v340_v43 = vmax.f32 %v308_v31, 0.0  ;;  %v322_v2 = vmax.f32 %v281_v22, 0.0  ;;  %v210_v30 = vadd.f32 %v1109_v59, %v69_v4 }
  0xf0   :  { %v319_v31 = vmax.f32 %v216_v24, 0.0  ;;  %v320_v0 = vmax.f32 %v278_v25, 0.0  ;;  %v316_v35 = vmax.f32 %v272_v63, 0.0 }
  0xf1   :  { %v315_v34 = vmax.f32 %v210_v30, 0.0 }
  0xf4   :  { %v248_v28 = vpop.f32.mrf.mxu0  ;;  %v310_v29 = vpop.f32.mrf.mxu1 }
  0xf5   :  { %v249_v32 = vadd.f32 %v248_v28, %v134_v17  ;;  %v311_v33 = vadd.f32 %v310_v29, %v134_v17  ;;  %v332_v17 = vmax.f32 %v296_v49, 0.0  ;;  %v321_v28 = vmax.f32 %v219_v8, 0.0  ;;  %v64_v29 = vpop.permute.xlu2 %63  ;;  %v368_v49 = vpop.permute.xlu0 %367 }
  0xf6   :  { %v388_v15 = vpop.permute.xlu1 %387 }
  0xf7   :  { %v341_v37 = vmax.f32 %v249_v32, 0.0  ;;  %v342_v38 = vmax.f32 %v311_v33, 0.0  ;;  %v207_v32 = vadd.f32 %v1105_v57, %v64_v29  ;;  %v269_v33 = vadd.f32 %v1107_v58, %v64_v29  ;;  %v344_v57 = vld [vmem:[%s1214_s3 + $0x8] sm:$0xff]  ;;  %v345_v58 = vld [vmem:[%s1214_s3 + $0x10] sm:$0xff] }
  0xf9   :  { %455 = vmatpush.msra.mxu2 %v341_v37  ;;  %505 = vmatpush.msra.mxu3 %v342_v38  ;;  %v313_v36 = vmax.f32 %v207_v32, 0.0  ;;  %v314_v59 = vmax.f32 %v269_v33, 0.0  ;;  %v346_v37 = vld [vmem:[%s1214_s3 + $0x18] sm:$0xff]  ;;  %v347_v38 = vld [vmem:[%s1214_s3 + $0x20] sm:$0xff] }
  0xfb   :  { %456 = vmatpush.msra.mxu2 %v339_v42  ;;  %506 = vmatpush.msra.mxu3 %v340_v43  ;;  %v351_v42 = vld [vmem:[%s1214_s3 + $0x40] sm:$0xff]  ;;  %v352_v43 = vld [vmem:[%s1214_s3 + $0x48] sm:$0xff]  ;;  %s869_s3 = smov [#allocation3]  }
  0xfc   :  { %s762_s25 = sshll.u32 %s869_s3, 4  ;;  %s763_s25 = int_to_ptr.vmem [resolvable:$true] %s762_s25 }
  0xfd   :  { %457 = vmatpush.msra.mxu2 %v337_v46  ;;  %507 = vmatpush.msra.mxu3 %v338_v47  ;;  %v378_v53 = vpop.permute.xlu2 %377  ;;  %v383_v54 = vpop.permute.xlu0 %382 }
  0xfe   :  { %v595_v11 = vpop.permute.xlu1 %594 }
  0xff   :  { %458 = vmatpush.msra.mxu2 %v335_v50  ;;  %508 = vmatpush.msra.mxu3 %v336_v51 }
 0x101   :  { %459 = vmatpush.msra.mxu2 %v333_v55  ;;  %509 = vmatpush.msra.mxu3 %v334_v56 }
 0x103   :  { %460 = vmatpush.msra.mxu2 %v331_v16  ;;  %510 = vmatpush.msra.mxu3 %v332_v17 }
 0x105   :  { %461 = vmatpush.msra.mxu2 %v329_v19  ;;  %511 = vmatpush.msra.mxu3 %v330_v20  ;;  %v393_v13 = vpop.permute.xlu2 %392  ;;  %v590_v17 = vpop.permute.xlu0 %589 }
 0x107   :  { %462 = vmatpush.msra.mxu2 %v327_v21  ;;  %512 = vmatpush.msra.mxu3 %v328_v7  ;;  %v398_v21 = vpop.permute.xlu1 %397 }
 0x109   :  { %463 = vmatpush.msra.mxu2 %v325_v23  ;;  %513 = vmatpush.msra.mxu3 %v326_v5 }
 0x10b   :  { %464 = vmatpush.msra.mxu2 %v323_v3  ;;  %514 = vmatpush.msra.mxu3 %v324_v26 }
 0x10d   :  { %465 = vmatpush.msra.mxu2 %v321_v28  ;;  %515 = vmatpush.msra.mxu3 %v322_v2  ;;  %v600_v19 = vpop.permute.xlu2 %599  ;;  %v605_v20 = vpop.permute.xlu0 %604 }
 0x10f   :  { %466 = vmatpush.msra.mxu2 %v319_v31  ;;  %516 = vmatpush.msra.mxu3 %v320_v0  ;;  %v615_v3 = vpop.permute.xlu1 %614 }
 0x111   :  { %467 = vmatpush.msra.mxu2 %v317_v61  ;;  %517 = vmatpush.msra.mxu3 %v318_v62 }
 0x113   :  { %468 = vmatpush.msra.mxu2 %v315_v34  ;;  %518 = vmatpush.msra.mxu3 %v316_v35 }
 0x115   :  { %469 = vmatpush.msra.mxu2 %v313_v36  ;;  %519 = vmatpush.msra.mxu3 %v314_v59  ;;  %v610_v7 = vpop.permute.xlu2 %609  ;;  %v403_v8 = vpop.permute.xlu0 %402 }
 0x116   :  { %805 = vmatmul.msk.f32.vlgmr.msra.gmra.mxu2 %vm420_vm2, %v343_v60  ;;  %816 = vmatmul.msk.f32.vlgmr.msra.gmra.mxu3 %vm420_vm2, %v343_v60 }
 0x11d   :  { %v408_v28 = vpop.permute.xlu2 %407  ;;  %v620_v31 = vpop.permute.xlu0 %619 }
 0x11e   :  { %806 = vmatmul.msk.f32.gmra.mxu2 %vm420_vm2, %v344_v57  ;;  %817 = vmatmul.msk.f32.gmra.mxu3 %vm420_vm2, %v344_v57 }
 0x126   :  { %807 = vmatmul.msk.f32.gmra.mxu2 %vm420_vm2, %v345_v58  ;;  %818 = vmatmul.msk.f32.gmra.mxu3 %vm420_vm2, %v345_v58 }
 0x12e   :  { %808 = vmatmul.msk.f32.gmra.mxu2 %vm420_vm2, %v346_v37  ;;  %819 = vmatmul.msk.f32.gmra.mxu3 %vm420_vm2, %v346_v37 }
 0x136   :  { %809 = vmatmul.msk.f32.gmra.mxu2 %vm420_vm2, %v347_v38  ;;  %820 = vmatmul.msk.f32.gmra.mxu3 %vm420_vm2, %v347_v38 }
 0x13e   :  { %810 = vmatmul.msk.f32.gmra.mxu2 %vm420_vm2, %v348_v39  ;;  %821 = vmatmul.msk.f32.gmra.mxu3 %vm420_vm2, %v348_v39 }
 0x146   :  { %811 = vmatmul.msk.f32.gmra.mxu2 %vm420_vm2, %v349_v40  ;;  %822 = vmatmul.msk.f32.gmra.mxu3 %vm420_vm2, %v349_v40 }
 0x14e   :  { %812 = vmatmul.msk.f32.gmra.mxu2 %vm420_vm2, %v350_v41  ;;  %823 = vmatmul.msk.f32.gmra.mxu3 %vm420_vm2, %v350_v41 }
 0x156   :  { %813 = vmatmul.msk.f32.gmra.mxu2 %vm420_vm2, %v351_v42  ;;  %824 = vmatmul.msk.f32.gmra.mxu3 %vm420_vm2, %v351_v42 }
 0x15e   :  { %814 = vmatmul.msk.f32.gmra.mxu2 %vm420_vm2, %v352_v43  ;;  %825 = vmatmul.msk.f32.gmra.mxu3 %vm420_vm2, %v352_v43 }
 0x166   :  { %815 = vmatmul.msk.f32.gmra.mxu2 %vm420_vm2, %v353_v44  ;;  %826 = vmatmul.msk.f32.gmra.mxu3 %vm420_vm2, %v353_v44 }
 0x199   :  { %v471_v45 = vpop.f32.mrf.mxu2  ;;  %v521_v46 = vpop.f32.mrf.mxu3 }
 0x19a   :  { %v472_v24 = vadd.f32 %v471_v45, %v368_v49  ;;  %v522_v25 = vadd.f32 %v521_v46, %v368_v49 }
 0x19c   :  { %v554_v30 = vmax.f32 %v472_v24, 0.0  ;;  %v555_v63 = vmax.f32 %v522_v25, 0.0 }
 0x19e   :  { %v642_v37 = vmul.f32 %v590_v17, %v554_v30  ;;  %v643_v38 = vmul.f32 %v590_v17, %v555_v63 }
 0x1a1   :  { %v474_v47 = vpop.f32.mrf.mxu2  ;;  %v524_v48 = vpop.f32.mrf.mxu3 }
 0x1a2   :  { %v475_v22 = vadd.f32 %v474_v47, %v373_v52  ;;  %v525_v23 = vadd.f32 %v524_v48, %v373_v52  ;;  %v413_v47 = vpop.permute.xlu1 %412 }
 0x1a4   :  { %v556_v27 = vmax.f32 %v475_v22, 0.0  ;;  %v557_v1 = vmax.f32 %v525_v23, 0.0 }
 0x1a6   :  { %v644_v62 = vmul.f32 %v595_v11, %v556_v27  ;;  %v645_v34 = vmul.f32 %v595_v11, %v557_v1 }
 0x1a8   :  { %v664_v43 = vadd.f32 %v644_v62, %v642_v37  ;;  %v682_v44 = vadd.f32 %v645_v34, %v643_v38 }
 0x1a9   :  { %v477_v50 = vpop.f32.mrf.mxu2  ;;  %v527_v51 = vpop.f32.mrf.mxu3 }
 0x1aa   :  { %v478_v26 = vadd.f32 %v477_v50, %v378_v53  ;;  %v528_v4 = vadd.f32 %v527_v51, %v378_v53  ;;  %v630_v63 = vpop.permute.xlu1 %629 }
 0x1ac   :  { %v558_v0 = vmax.f32 %v478_v26, 0.0  ;;  %v559_v32 = vmax.f32 %v528_v4, 0.0 }
 0x1ae   :  { %v646_v39 = vmul.f32 %v600_v19, %v558_v0  ;;  %v647_v40 = vmul.f32 %v600_v19, %v559_v32 }
 0x1b1   :  { %v480_v55 = vpop.f32.mrf.mxu2  ;;  %v530_v56 = vpop.f32.mrf.mxu3 }
 0x1b2   :  { %v481_v2 = vadd.f32 %v480_v55, %v383_v54  ;;  %v531_v29 = vadd.f32 %v530_v56, %v383_v54  ;;  %v625_v54 = vpop.permute.xlu2 %624  ;;  %v665_v55 = vadd.f32 %v664_v43, %v646_v39  ;;  %v683_v56 = vadd.f32 %v682_v44, %v647_v40 }
 0x1b4   :  { %v560_v59 = vmax.f32 %v481_v2, 0.0  ;;  %v561_v60 = vmax.f32 %v531_v29, 0.0 }
 0x1b6   :  { %v648_v48 = vmul.f32 %v605_v20, %v560_v59  ;;  %v649_v49 = vmul.f32 %v605_v20, %v561_v60  ;;  %v418_v20 = vpop.permute.xlu0 %417 }
 0x1b8   :  { %v666_v19 = vadd.f32 %v665_v55, %v648_v48 }
 0x1b9   :  { %v483_v14 = vpop.f32.mrf.mxu2  ;;  %v533_v16 = vpop.f32.mrf.mxu3 }
 0x1ba   :  { %v484_v33 = vadd.f32 %v483_v14, %v388_v15  ;;  %v534_v61 = vadd.f32 %v533_v16, %v388_v15  ;;  %v635_v34 = vpop.permute.xlu2 %634 }
 0x1bc   :  { %v562_v41 = vmax.f32 %v484_v33, 0.0  ;;  %v563_v42 = vmax.f32 %v534_v61, 0.0 }
 0x1be   :  { %v650_v15 = vmul.f32 %v610_v7, %v562_v41  ;;  %v640_v38 = vpop.permute.xlu0 %639 }
 0x1c1   :  { %v486_v12 = vpop.f32.mrf.mxu2  ;;  %v536_v18 = vpop.f32.mrf.mxu3 }
 0x1c2   :  { %v487_v57 = vadd.f32 %v486_v12, %v393_v13  ;;  %v537_v58 = vadd.f32 %v536_v18, %v393_v13  ;;  %v651_v13 = vmul.f32 %v610_v7, %v563_v42 }
 0x1c4   :  { %v564_v50 = vmax.f32 %v487_v57, 0.0  ;;  %v565_v51 = vmax.f32 %v537_v58, 0.0 }
 0x1c9   :  { %v489_v9 = vpop.f32.mrf.mxu2  ;;  %v539_v10 = vpop.f32.mrf.mxu3 }
 0x1ca   :  { %v490_v45 = vadd.f32 %v489_v9, %v398_v21  ;;  %v540_v46 = vadd.f32 %v539_v10, %v398_v21  ;;  %v684_v9 = vadd.f32 %v683_v56, %v649_v49  ;;  %v652_v10 = vmul.f32 %v615_v3, %v564_v50 }
 0x1cb   :  { %v653_v21 = vmul.f32 %v615_v3, %v565_v51 }
 0x1cc   :  { %v566_v14 = vmax.f32 %v490_v45, 0.0  ;;  %v567_v16 = vmax.f32 %v540_v46, 0.0  ;;  %v685_v24 = vadd.f32 %v684_v9, %v651_v13 }
 0x1ce   :  { %v654_v25 = vmul.f32 %v620_v31, %v566_v14  ;;  %v655_v26 = vmul.f32 %v620_v31, %v567_v16  ;;  %v686_v1 = vadd.f32 %v685_v24, %v653_v21 }
 0x1d0   :  { %v687_v3 = vadd.f32 %v686_v1, %v655_v26 }
 0x1d1   :  { %v492_v5 = vpop.f32.mrf.mxu2  ;;  %v542_v6 = vpop.f32.mrf.mxu3 }
 0x1d2   :  { %v493_v52 = vadd.f32 %v492_v5, %v403_v8  ;;  %v543_v53 = vadd.f32 %v542_v6, %v403_v8  ;;  %v667_v6 = vadd.f32 %v666_v19, %v650_v15  ;;  %v703_v15 = vpop.permute.xlu1 %702 }
 0x1d3   :  { %v705_v16 = vperm.slane %v703_v15, 0 }
 0x1d4   :  { %v568_v22 = vmax.f32 %v493_v52, 0.0  ;;  %v569_v23 = vmax.f32 %v543_v53, 0.0  ;;  %v668_v27 = vadd.f32 %v667_v6, %v652_v10 }
 0x1d6   :  { %v657_v2 = vmul.f32 %v625_v54, %v569_v23  ;;  %v669_v0 = vadd.f32 %v668_v27, %v654_v25 }
 0x1d8   :  { %v688_v31 = vadd.f32 %v687_v3, %v657_v2 }
 0x1d9   :  { %v495_v35 = vpop.f32.mrf.mxu2  ;;  %v545_v36 = vpop.f32.mrf.mxu3 }
 0x1da   :  { %v496_v17 = vadd.f32 %v495_v35, %v408_v28  ;;  %v546_v11 = vadd.f32 %v545_v36, %v408_v28  ;;  %v656_v28 = vmul.f32 %v625_v54, %v568_v22 }
 0x1dc   :  { %v570_v7 = vmax.f32 %v496_v17, 0.0  ;;  %v571_v4 = vmax.f32 %v546_v11, 0.0  ;;  %v670_v59 = vadd.f32 %v669_v0, %v656_v28 }
 0x1de   :  { %v658_v32 = vmul.f32 %v630_v63, %v570_v7  ;;  %v659_v33 = vmul.f32 %v630_v63, %v571_v4  ;;  %v752_v63 = vlaneseq }
 0x1e0   :  { %v671_v39 = vadd.f32 %v670_v59, %v658_v32  ;;  %v689_v40 = vadd.f32 %v688_v31, %v659_v33  ;;  %vm754_vm13 = vcmp.lt.s32.totalorder %v752_v63, 256 }
 0x1e1   :  { %v498_v12 = vpop.f32.mrf.mxu2  ;;  %v548_v18 = vpop.f32.mrf.mxu3 }
 0x1e2   :  { %v499_v5 = vadd.f32 %v498_v12, %v413_v47  ;;  %v549_v8 = vadd.f32 %v548_v18, %v413_v47 }
 0x1e4   :  { %v572_v29 = vmax.f32 %v499_v5, 0.0  ;;  %v573_v30 = vmax.f32 %v549_v8, 0.0 }
 0x1e6   :  { %v660_v60 = vmul.f32 %v635_v34, %v572_v29  ;;  %v661_v57 = vmul.f32 %v635_v34, %v573_v30 }
 0x1e8   :  { %v672_v43 = vadd.f32 %v671_v39, %v660_v60  ;;  %v690_v44 = vadd.f32 %v689_v40, %v661_v57 }
 0x1e9   :  { %v501_v61 = vpop.f32.mrf.mxu2  ;;  %v551_v62 = vpop.f32.mrf.mxu3 }
 0x1ea   :  { %v502_v35 = vadd.f32 %v501_v61, %v418_v20  ;;  %v552_v36 = vadd.f32 %v551_v62, %v418_v20 }
 0x1ec   :  { %v574_v58 = vmax.f32 %v502_v35, 0.0  ;;  %v575_v37 = vmax.f32 %v552_v36, 0.0 }
 0x1ee   :  { %v662_v41 = vmul.f32 %v640_v38, %v574_v58  ;;  %v663_v42 = vmul.f32 %v640_v38, %v575_v37 }
 0x1f0   :  { %v674_v45 = vsel %vm673_vm3, %v662_v41, 0.0  ;;  %v691_v46 = vsel %vm673_vm3, %v663_v42, 0.0 }
 0x1f1   :  { %v675_v47 = vadd.f32 %v674_v45, %v672_v43  ;;  %v692_v48 = vadd.f32 %v691_v46, %v690_v44 }
 0x1f3   :  { %v676_v49 = vrot.slane %v675_v47, 4  ;;  %v693_v50 = vrot.slane %v692_v48, 4 }
 0x1f5   :  { %v677_v51 = vadd.f32 %v676_v49, %v675_v47  ;;  %v694_v52 = vadd.f32 %v693_v50, %v692_v48 }
 0x1f7   :  { %v678_v53 = vrot.slane %v677_v51, 2  ;;  %v695_v54 = vrot.slane %v694_v52, 2 }
 0x1f9   :  { %v679_v55 = vadd.f32 %v678_v53, %v677_v51  ;;  %v696_v56 = vadd.f32 %v695_v54, %v694_v52 }
 0x1fb   :  { %v680_v13 = vrot.slane %v679_v55, 1  ;;  %v697_v14 = vrot.slane %v696_v56, 1 }
 0x1fd   :  { %v681_v17 = vadd.f32 %v680_v13, %v679_v55  ;;  %v698_v11 = vadd.f32 %v697_v14, %v696_v56 }
 0x1ff   :  { %v706_v12 = vadd.f32 %v705_v16, %v681_v17  ;;  %v707_v18 = vadd.f32 %v705_v16, %v698_v11 }
 0x201   :  { %v827_v19 = vmul.f32 -1.442695, %v706_v12  ;;  %v828_v9 = vmul.f32 -1.442695, %v707_v18 }
 0x203   :  { %834 = vpow2.f32 %v827_v19 }
 0x204   :  { %836 = vpow2.f32 %v828_v9 }
 0x209   :  { %v835_v10 = vpop.eup %834 }
 0x20a   :  { %v837_v21 = vpop.eup %836  ;;  %v714_v20 = vadd.f32 1.0, %v835_v10 }
 0x20b   :  { %v715_v22 = vadd.f32 1.0, %v837_v21 }
 0x20c   :  { %838 = vrcp.f32 %v714_v20  ;;  %vm721_vm6 = vweird.f32 %v714_v20  ;;  %v727_v28 = vand.u32 2147483648, %v714_v20  ;;  %v725_v29 = vand.u32 2147483647, %v714_v20 }
 0x20d   :  { %840 = vrcp.f32 %v715_v22  ;;  %v742_v7 = vand.u32 2147483648, %v715_v22  ;;  %v740_v27 = vand.u32 2147483647, %v715_v22  ;;  %vm736_vm8 = vweird.f32 %v715_v22 }
 0x20e   :  { %v728_v33 = vor.u32 1.1754944e-38, %v727_v28  ;;  %vm726_vm12 = vcmp.eq.f32.partialorder %v725_v29, 8.507059e+37 }
 0x20f   :  { %v743_v0 = vor.u32 1.1754944e-38, %v742_v7  ;;  %vm741_vm10 = vcmp.eq.f32.partialorder %v740_v27, 8.507059e+37 }
 0x212   :  { %v839_v23 = vpop.eup %838 }
 0x213   :  { %v841_v5 = vpop.eup %840  ;;  %v717_v8 = vmul.f32 %v839_v23, %v714_v20  ;;  %vm722_vm4 = vweird.f32 %v839_v23 }
 0x214   :  { %v732_v6 = vmul.f32 %v841_v5, %v715_v22  ;;  %vm737_vm5 = vweird.f32 %v841_v5  ;;  %vm1202_vm7 = vmor %vm721_vm6, %vm722_vm4 }
 0x215   :  { %v718_v24 = vsub.f32 1.0, %v717_v8  ;;  %vm738_vm9 = vmor %vm736_vm8, %vm737_vm5 }
 0x216   :  { %v733_v25 = vsub.f32 1.0, %v732_v6 }
 0x217   :  { %v719_v26 = vmul.f32 %v839_v23, %v718_v24 }
 0x218   :  { %v734_v4 = vmul.f32 %v841_v5, %v733_v25 }
 0x219   :  { %v720_v1 = vadd.f32 %v839_v23, %v719_v26 }
 0x21a   :  { %v735_v30 = vadd.f32 %v841_v5, %v734_v4 }
 0x21b   :  { %v724_v3 = vsel %vm1202_vm7, %v839_v23, %v720_v1 }
 0x21c   :  { %v739_v32 = vsel %vm738_vm9, %v841_v5, %v735_v30  ;;  %v729_v34 = vsel %vm726_vm12, %v728_v33, %v724_v3 }
 0x21d   :  { %v744_v61 = vsel %vm741_vm10, %v743_v0, %v739_v32 }
 0x21e   :  { %v748_v62 = vrot.slane %v744_v61, 7 }
 0x220   :  { %v750_v35 = vsel %vm749_vm11, %v729_v34, %v748_v62 }
 0x221   :  { %756 = vst.msk [vmem:[#allocation3] sm:$0x3] %vm754_vm13, %v750_v35 }
 0x222   :  { %767 = dma.vmem_to_hbm [thread:$0]  %s763_s25, 32, %s765_s4, [#allocation4]  }
 0x223   :  { %866 = dma.done.wait [#allocation4], 32  }
 0x224   :  { %867 = vsyncadd [#allocation4], 4294967264 }
 0x225   :  { %772 = vsyncpa [#allocation4], 1 }

</bundles_post_ra>
